<compile_context>
chip_gen: v7x
topology: tpu7x:2x2x1
jax: 0.10.0
libtpu: 0.0.40
codegen_flags: <defaults>
</compile_context>

<pallas_src>
import functools
import math

import jax
import jax.numpy as jnp
from jax import lax
from jax.experimental import pallas as pl
from jax.experimental.pallas import tpu as pltpu


# ---------------------------------------------------------------------------
# Fused forward kernel
# ---------------------------------------------------------------------------
def _fused_vae_kernel(*refs, n_q, n_p, dim_z):
    """Entire VAE forward for one batch tile, fully resident in VMEM.

    Ref order:
      x, eps,
      [qW, qb] * n_q,
      headW, headb,            # concatenated q_mean | q_var projection
      [pW, pb] * n_p,
      pmW, pmb,
      x_mean, z_mu, z_var, z   # outputs
    """
    f32 = jnp.float32
    idx = 0
    x_ref = refs[idx]; idx += 1
    eps_ref = refs[idx]; idx += 1
    q_layers = []
    for _ in range(n_q):
        q_layers.append((refs[idx], refs[idx + 1])); idx += 2
    head_w_ref = refs[idx]; head_b_ref = refs[idx + 1]; idx += 2
    p_layers = []
    for _ in range(n_p):
        p_layers.append((refs[idx], refs[idx + 1])); idx += 2
    pm_w_ref = refs[idx]; pm_b_ref = refs[idx + 1]; idx += 2
    x_mean_ref, z_mu_ref, z_var_ref, z_ref = refs[idx:idx + 4]

    # --- encoder MLP (Linear + tanh per layer) ---
    h = x_ref[...]
    for w_ref, b_ref in q_layers:
        h = jnp.tanh(jnp.dot(h, w_ref[...], preferred_element_type=f32) + b_ref[...])

    # --- fused heads: single lane-dense matmul, static column split ---
    heads = jnp.dot(h, head_w_ref[...], preferred_element_type=f32) + head_b_ref[...]
    z_mu = heads[:, :dim_z]
    pre_var = heads[:, dim_z:2 * dim_z]
    # numerically stable softplus = max(y, 0) + log(1 + exp(-|y|))
    z_var = jnp.maximum(pre_var, 0.0) + jnp.log(1.0 + jnp.exp(-jnp.abs(pre_var)))

    # --- reparameterization (eps drawn outside the kernel) ---
    z = z_mu + jnp.sqrt(z_var) * eps_ref[...]

    # --- decoder MLP + p_mean ---
    hz = z
    for w_ref, b_ref in p_layers:
        hz = jnp.tanh(jnp.dot(hz, w_ref[...], preferred_element_type=f32) + b_ref[...])
    x_mean = jnp.dot(hz, pm_w_ref[...], preferred_element_type=f32) + pm_b_ref[...]

    x_mean_ref[...] = x_mean.astype(x_mean_ref.dtype)
    z_mu_ref[...] = z_mu.astype(z_mu_ref.dtype)
    z_var_ref[...] = z_var.astype(z_var_ref.dtype)
    z_ref[...] = z.astype(z_ref.dtype)


def vae_forward(params, x, eps, *, dim_z):
    """Mirrors VAE.forward (mlp arch). Returns (x_mean, z_mu, z_var, log_det_j, z, z)."""
    B, dim_x = x.shape
    # Batch tile: respects the (8, 128) sublane constraint; with B % 8 == 0 the
    # batch axis becomes a "parallel" grid dimension (megacore-friendly on v7x).
    TB = 8 if B % 8 == 0 else B
    nb = B // TB

    q_nn = params["q_nn"]
    p_nn = params["p_nn"]

    # Concatenate q_mean / q_var into one head projection (one MXU matmul,
    # one lane-dense output instead of two narrow ones).
    head_w = jnp.concatenate([params["q_mean"][0], params["q_var"][0]], axis=1)
    head_b = jnp.concatenate([params["q_mean"][1], params["q_var"][1]], axis=0)

    inputs = []
    in_specs = []

    def add_batched(arr):
        inputs.append(arr)
        in_specs.append(pl.BlockSpec((TB, arr.shape[1]), lambda i: (i, 0)))

    def add_weight(w, b):
        inputs.append(w)
        in_specs.append(pl.BlockSpec(w.shape, lambda i: (0, 0)))
        b2 = b.reshape(1, -1)
        inputs.append(b2)
        in_specs.append(pl.BlockSpec(b2.shape, lambda i: (0, 0)))

    add_batched(x)
    add_batched(eps)
    for w, b in q_nn:
        add_weight(w, b)
    add_weight(head_w, head_b)
    for w, b in p_nn:
        add_weight(w, b)
    add_weight(*params["p_mean"])

    out_shape = (
        jax.ShapeDtypeStruct((B, dim_x), jnp.float32),   # x_mean
        jax.ShapeDtypeStruct((B, dim_z), jnp.float32),   # z_mu
        jax.ShapeDtypeStruct((B, dim_z), jnp.float32),   # z_var
        jax.ShapeDtypeStruct((B, dim_z), jnp.float32),   # z
    )
    out_specs = (
        pl.BlockSpec((TB, dim_x), lambda i: (i, 0)),
        pl.BlockSpec((TB, dim_z), lambda i: (i, 0)),
        pl.BlockSpec((TB, dim_z), lambda i: (i, 0)),
        pl.BlockSpec((TB, dim_z), lambda i: (i, 0)),
    )

    kernel = functools.partial(
        _fused_vae_kernel, n_q=len(q_nn), n_p=len(p_nn), dim_z=dim_z)

    x_mean, z_mu, z_var, z = pl.pallas_call(
        kernel,
        grid=(nb,),
        out_shape=out_shape,
        in_specs=in_specs,
        out_specs=out_specs,
        compiler_params=pltpu.CompilerParams(
            dimension_semantics=("parallel",)),
    )(*inputs)

    # Plain VAE: log|det J| is a constant zero tensor of shape (1,), z_0 == z_k.
    log_det_j = jnp.zeros((1,), jnp.float32)
    return x_mean, z_mu, z_var, log_det_j, z, z


# ---------------------------------------------------------------------------
# Parameter construction (PyTorch-default-style uniform init, weights as (in,out))
# ---------------------------------------------------------------------------
def _init_linear(key, d_in, d_out):
    kw, kb = jax.random.split(key)
    bound = 1.0 / math.sqrt(d_in)
    w = jax.random.uniform(kw, (d_in, d_out), jnp.float32, -bound, bound)
    b = jax.random.uniform(kb, (d_out,), jnp.float32, -bound, bound)
    return (w, b)


def init_params(key, dim_x, dim_z, dims_x2h, dims_z2h):
    keys = iter(jax.random.split(key, 16))
    params = {}
    q_nn = []
    dims = [dim_x] + list(dims_x2h)
    for i in range(len(dims) - 1):
        q_nn.append(_init_linear(next(keys), dims[i], dims[i + 1]))
    params["q_nn"] = q_nn
    h_dim = dims_x2h[-1]
    params["q_mean"] = _init_linear(next(keys), h_dim, dim_z)
    params["q_var"] = _init_linear(next(keys), h_dim, dim_z)
    p_nn = []
    dims = [dim_z] + list(dims_z2h)
    for i in range(len(dims) - 1):
        p_nn.append(_init_linear(next(keys), dims[i], dims[i + 1]))
    params["p_nn"] = p_nn
    params["p_mean"] = _init_linear(next(keys), dims_z2h[-1], dim_x)
    # TODO(synk): p_var head exists in the module but is never used by forward(); omitted.
    return params


# ---------------------------------------------------------------------------
# Pure-JAX reference (for correctness checking)
# ---------------------------------------------------------------------------
def reference_forward(params, x, eps, *, dim_z):
    hp = lax.Precision.HIGHEST

    def lin(h, w, b):
        return jnp.dot(h, w, precision=hp) + b

    h = x
    for w, b in params["q_nn"]:
        h = jnp.tanh(lin(h, w, b))
    z_mu = lin(h, *params["q_mean"])
    z_var = jax.nn.softplus(lin(h, *params["q_var"]))
    z = z_mu + jnp.sqrt(z_var) * eps
    hz = z
    for w, b in params["p_nn"]:
        hz = jnp.tanh(lin(hz, w, b))
    x_mean = lin(hz, *params["p_mean"])
    log_det_j = jnp.zeros((1,), jnp.float32)
    return x_mean, z_mu, z_var, log_det_j, z, z


# ---------------------------------------------------------------------------
if __name__ == "__main__":
    B = 8
    DIM_X = 16          # input_size = [16]  -> dim_x = 16 (MLP branch consumes flat vectors)
    DIM_Z = 8
    DIMS_X2H = [32, 32]
    DIMS_Z2H = [32, 32]

    root = jax.random.PRNGKey(0)
    k_params, k_x, k_eps = jax.random.split(root, 3)

    params = init_params(k_params, DIM_X, DIM_Z, DIMS_X2H, DIMS_Z2H)
    x = jax.random.normal(k_x, (B, DIM_X), jnp.float32)
    eps = jax.random.normal(k_eps, (B, DIM_Z), jnp.float32)  # reparameterization noise

    fwd = jax.jit(functools.partial(vae_forward, dim_z=DIM_Z))
    outs = jax.block_until_ready(fwd(params, x, eps))

    refs = reference_forward(params, x, eps, dim_z=DIM_Z)
    names = ["x_mean", "z_mu", "z_var", "log_det_j", "z0", "z_k"]
    for name, o, r in zip(names, outs, refs):
        assert o.shape == r.shape, (name, o.shape, r.shape)
        assert bool(jnp.all(jnp.isfinite(o))), name
        err = float(jnp.max(jnp.abs(o - r)))
        assert bool(jnp.allclose(o, r, atol=1e-4, rtol=1e-4)), (name, err)

    print("KERNEL_OK")
</pallas_src>

<mosaic_0001>
module attributes {stable_mosaic.version = 11 : i64} {
  func.func @_fused_vae_kernel(%arg0: i32, %arg1: memref<8x16xf32, #tpu.memory_space<vmem>>, %arg2: memref<8x8xf32, #tpu.memory_space<vmem>>, %arg3: memref<16x32xf32, #tpu.memory_space<vmem>>, %arg4: memref<1x32xf32, #tpu.memory_space<vmem>>, %arg5: memref<32x32xf32, #tpu.memory_space<vmem>>, %arg6: memref<1x32xf32, #tpu.memory_space<vmem>>, %arg7: memref<32x16xf32, #tpu.memory_space<vmem>>, %arg8: memref<1x16xf32, #tpu.memory_space<vmem>>, %arg9: memref<8x32xf32, #tpu.memory_space<vmem>>, %arg10: memref<1x32xf32, #tpu.memory_space<vmem>>, %arg11: memref<32x32xf32, #tpu.memory_space<vmem>>, %arg12: memref<1x32xf32, #tpu.memory_space<vmem>>, %arg13: memref<32x16xf32, #tpu.memory_space<vmem>>, %arg14: memref<1x16xf32, #tpu.memory_space<vmem>>, %arg15: memref<8x16xf32, #tpu.memory_space<vmem>>, %arg16: memref<8x8xf32, #tpu.memory_space<vmem>>, %arg17: memref<8x8xf32, #tpu.memory_space<vmem>>, %arg18: memref<8x8xf32, #tpu.memory_space<vmem>>) attributes {dimension_semantics = [#tpu.dimension_semantics<parallel>], iteration_bounds = array<i64: 1>, scalar_prefetch = 0 : i64, scratch_operands = 0 : i64, tpu.core_type = #tpu.core_type<tc>, window_params = [{transform_indices = @transform_0, window_bounds = array<i64: 8, 16>}, {transform_indices = @transform_1, window_bounds = array<i64: 8, 8>}, {pipeline_mode = #tpu.pipeline_mode<synchronous>, transform_indices = @transform_2, window_bounds = array<i64: 16, 32>}, {pipeline_mode = #tpu.pipeline_mode<synchronous>, transform_indices = @transform_3, window_bounds = array<i64: 1, 32>}, {pipeline_mode = #tpu.pipeline_mode<synchronous>, transform_indices = @transform_4, window_bounds = array<i64: 32, 32>}, {pipeline_mode = #tpu.pipeline_mode<synchronous>, transform_indices = @transform_5, window_bounds = array<i64: 1, 32>}, {pipeline_mode = #tpu.pipeline_mode<synchronous>, transform_indices = @transform_6, window_bounds = array<i64: 32, 16>}, {pipeline_mode = #tpu.pipeline_mode<synchronous>, transform_indices = @transform_7, window_bounds = array<i64: 1, 16>}, {pipeline_mode = #tpu.pipeline_mode<synchronous>, transform_indices = @transform_8, window_bounds = array<i64: 8, 32>}, {pipeline_mode = #tpu.pipeline_mode<synchronous>, transform_indices = @transform_9, window_bounds = array<i64: 1, 32>}, {pipeline_mode = #tpu.pipeline_mode<synchronous>, transform_indices = @transform_10, window_bounds = array<i64: 32, 32>}, {pipeline_mode = #tpu.pipeline_mode<synchronous>, transform_indices = @transform_11, window_bounds = array<i64: 1, 32>}, {pipeline_mode = #tpu.pipeline_mode<synchronous>, transform_indices = @transform_12, window_bounds = array<i64: 32, 16>}, {pipeline_mode = #tpu.pipeline_mode<synchronous>, transform_indices = @transform_13, window_bounds = array<i64: 1, 16>}, {transform_indices = @transform_14, window_bounds = array<i64: 8, 16>}, {transform_indices = @transform_15, window_bounds = array<i64: 8, 8>}, {transform_indices = @transform_16, window_bounds = array<i64: 8, 8>}, {transform_indices = @transform_17, window_bounds = array<i64: 8, 8>}]} {
    %c0 = arith.constant 0 : index
    %c0_0 = arith.constant 0 : index
    %0 = vector.load %arg1[%c0, %c0_0] : memref<8x16xf32, #tpu.memory_space<vmem>>, vector<8x16xf32>
    %c0_1 = arith.constant 0 : index
    %c0_2 = arith.constant 0 : index
    %1 = vector.load %arg3[%c0_1, %c0_2] : memref<16x32xf32, #tpu.memory_space<vmem>>, vector<16x32xf32>
    %cst = arith.constant dense<0.000000e+00> : vector<8x32xf32>
    %2 = tpu.matmul %0, %1, %cst {dimension_numbers = #tpu.dot_dimension_numbers<[1], [0], [0], [1], [0, 0, 1, 1], [], []>} : vector<8x16xf32>, vector<16x32xf32>, vector<8x32xf32> -> vector<8x32xf32>
    %c0_3 = arith.constant 0 : index
    %c0_4 = arith.constant 0 : index
    %3 = vector.load %arg4[%c0_3, %c0_4] : memref<1x32xf32, #tpu.memory_space<vmem>>, vector<1x32xf32>
    %4 = vector.broadcast %3 : vector<1x32xf32> to vector<8x32xf32>
    %5 = arith.addf %2, %4 : vector<8x32xf32>
    %6 = math.tanh %5 : vector<8x32xf32>
    %c0_5 = arith.constant 0 : index
    %c0_6 = arith.constant 0 : index
    %7 = vector.load %arg5[%c0_5, %c0_6] : memref<32x32xf32, #tpu.memory_space<vmem>>, vector<32x32xf32>
    %cst_7 = arith.constant dense<0.000000e+00> : vector<8x32xf32>
    %8 = tpu.matmul %6, %7, %cst_7 {dimension_numbers = #tpu.dot_dimension_numbers<[1], [0], [0], [1], [0, 0, 1, 1], [], []>} : vector<8x32xf32>, vector<32x32xf32>, vector<8x32xf32> -> vector<8x32xf32>
    %c0_8 = arith.constant 0 : index
    %c0_9 = arith.constant 0 : index
    %9 = vector.load %arg6[%c0_8, %c0_9] : memref<1x32xf32, #tpu.memory_space<vmem>>, vector<1x32xf32>
    %10 = vector.broadcast %9 : vector<1x32xf32> to vector<8x32xf32>
    %11 = arith.addf %8, %10 : vector<8x32xf32>
    %12 = math.tanh %11 : vector<8x32xf32>
    %c0_10 = arith.constant 0 : index
    %c0_11 = arith.constant 0 : index
    %13 = vector.load %arg7[%c0_10, %c0_11] : memref<32x16xf32, #tpu.memory_space<vmem>>, vector<32x16xf32>
    %cst_12 = arith.constant dense<0.000000e+00> : vector<8x16xf32>
    %14 = tpu.matmul %12, %13, %cst_12 {dimension_numbers = #tpu.dot_dimension_numbers<[1], [0], [0], [1], [0, 0, 1, 1], [], []>} : vector<8x32xf32>, vector<32x16xf32>, vector<8x16xf32> -> vector<8x16xf32>
    %c0_13 = arith.constant 0 : index
    %c0_14 = arith.constant 0 : index
    %15 = vector.load %arg8[%c0_13, %c0_14] : memref<1x16xf32, #tpu.memory_space<vmem>>, vector<1x16xf32>
    %16 = vector.broadcast %15 : vector<1x16xf32> to vector<8x16xf32>
    %17 = arith.addf %14, %16 : vector<8x16xf32>
    %18 = vector.extract_strided_slice %17 {offsets = [0, 0], sizes = [8, 8], strides = [1, 1]} : vector<8x16xf32> to vector<8x8xf32>
    %19 = vector.extract_strided_slice %17 {offsets = [0, 8], sizes = [8, 8], strides = [1, 1]} : vector<8x16xf32> to vector<8x8xf32>
    %cst_15 = arith.constant 0.000000e+00 : f32
    %20 = vector.broadcast %cst_15 : f32 to vector<8x8xf32>
    %21 = arith.maximumf %19, %20 : vector<8x8xf32>
    %22 = math.absf %19 : vector<8x8xf32>
    %cst_16 = arith.constant 0.000000e+00 : f32
    %23 = vector.broadcast %cst_16 : f32 to vector<8x8xf32>
    %24 = arith.subf %23, %22 : vector<8x8xf32>
    %25 = math.exp %24 : vector<8x8xf32>
    %cst_17 = arith.constant 1.000000e+00 : f32
    %26 = vector.broadcast %cst_17 : f32 to vector<8x8xf32>
    %27 = arith.addf %26, %25 : vector<8x8xf32>
    %28 = math.log %27 : vector<8x8xf32>
    %29 = arith.addf %21, %28 : vector<8x8xf32>
    %30 = math.sqrt %29 : vector<8x8xf32>
    %c0_18 = arith.constant 0 : index
    %c0_19 = arith.constant 0 : index
    %31 = vector.load %arg2[%c0_18, %c0_19] : memref<8x8xf32, #tpu.memory_space<vmem>>, vector<8x8xf32>
    %32 = arith.mulf %30, %31 : vector<8x8xf32>
    %33 = arith.addf %18, %32 : vector<8x8xf32>
    %c0_20 = arith.constant 0 : index
    %c0_21 = arith.constant 0 : index
    %34 = vector.load %arg9[%c0_20, %c0_21] : memref<8x32xf32, #tpu.memory_space<vmem>>, vector<8x32xf32>
    %cst_22 = arith.constant dense<0.000000e+00> : vector<8x32xf32>
    %35 = tpu.matmul %33, %34, %cst_22 {dimension_numbers = #tpu.dot_dimension_numbers<[1], [0], [0], [1], [0, 0, 1, 1], [], []>} : vector<8x8xf32>, vector<8x32xf32>, vector<8x32xf32> -> vector<8x32xf32>
    %c0_23 = arith.constant 0 : index
    %c0_24 = arith.constant 0 : index
    %36 = vector.load %arg10[%c0_23, %c0_24] : memref<1x32xf32, #tpu.memory_space<vmem>>, vector<1x32xf32>
    %37 = vector.broadcast %36 : vector<1x32xf32> to vector<8x32xf32>
    %38 = arith.addf %35, %37 : vector<8x32xf32>
    %39 = math.tanh %38 : vector<8x32xf32>
    %c0_25 = arith.constant 0 : index
    %c0_26 = arith.constant 0 : index
    %40 = vector.load %arg11[%c0_25, %c0_26] : memref<32x32xf32, #tpu.memory_space<vmem>>, vector<32x32xf32>
    %cst_27 = arith.constant dense<0.000000e+00> : vector<8x32xf32>
    %41 = tpu.matmul %39, %40, %cst_27 {dimension_numbers = #tpu.dot_dimension_numbers<[1], [0], [0], [1], [0, 0, 1, 1], [], []>} : vector<8x32xf32>, vector<32x32xf32>, vector<8x32xf32> -> vector<8x32xf32>
    %c0_28 = arith.constant 0 : index
    %c0_29 = arith.constant 0 : index
    %42 = vector.load %arg12[%c0_28, %c0_29] : memref<1x32xf32, #tpu.memory_space<vmem>>, vector<1x32xf32>
    %43 = vector.broadcast %42 : vector<1x32xf32> to vector<8x32xf32>
    %44 = arith.addf %41, %43 : vector<8x32xf32>
    %45 = math.tanh %44 : vector<8x32xf32>
    %c0_30 = arith.constant 0 : index
    %c0_31 = arith.constant 0 : index
    %46 = vector.load %arg13[%c0_30, %c0_31] : memref<32x16xf32, #tpu.memory_space<vmem>>, vector<32x16xf32>
    %cst_32 = arith.constant dense<0.000000e+00> : vector<8x16xf32>
    %47 = tpu.matmul %45, %46, %cst_32 {dimension_numbers = #tpu.dot_dimension_numbers<[1], [0], [0], [1], [0, 0, 1, 1], [], []>} : vector<8x32xf32>, vector<32x16xf32>, vector<8x16xf32> -> vector<8x16xf32>
    %c0_33 = arith.constant 0 : index
    %c0_34 = arith.constant 0 : index
    %48 = vector.load %arg14[%c0_33, %c0_34] : memref<1x16xf32, #tpu.memory_space<vmem>>, vector<1x16xf32>
    %49 = vector.broadcast %48 : vector<1x16xf32> to vector<8x16xf32>
    %50 = arith.addf %47, %49 : vector<8x16xf32>
    %c0_35 = arith.constant 0 : index
    %c0_36 = arith.constant 0 : index
    %51 = vector.load %arg15[%c0_35, %c0_36] : memref<8x16xf32, #tpu.memory_space<vmem>>, vector<8x16xf32>
    tpu.vector_store %arg15[%c0_35, %c0_36], %50 {strides = array<i32>} : memref<8x16xf32, #tpu.memory_space<vmem>>, vector<8x16xf32>,
    %c0_37 = arith.constant 0 : index
    %c0_38 = arith.constant 0 : index
    %52 = vector.load %arg16[%c0_37, %c0_38] : memref<8x8xf32, #tpu.memory_space<vmem>>, vector<8x8xf32>
    tpu.vector_store %arg16[%c0_37, %c0_38], %18 {strides = array<i32>} : memref<8x8xf32, #tpu.memory_space<vmem>>, vector<8x8xf32>,
    %c0_39 = arith.constant 0 : index
    %c0_40 = arith.constant 0 : index
    %53 = vector.load %arg17[%c0_39, %c0_40] : memref<8x8xf32, #tpu.memory_space<vmem>>, vector<8x8xf32>
    tpu.vector_store %arg17[%c0_39, %c0_40], %29 {strides = array<i32>} : memref<8x8xf32, #tpu.memory_space<vmem>>, vector<8x8xf32>,
    %c0_41 = arith.constant 0 : index
    %c0_42 = arith.constant 0 : index
    %54 = vector.load %arg18[%c0_41, %c0_42] : memref<8x8xf32, #tpu.memory_space<vmem>>, vector<8x8xf32>
    tpu.vector_store %arg18[%c0_41, %c0_42], %33 {strides = array<i32>} : memref<8x8xf32, #tpu.memory_space<vmem>>, vector<8x8xf32>,
    return
  }
  func.func @transform_0(%arg0: i32) -> (i32, i32) {
    %c0_i32 = arith.constant 0 : i32
    %c0_i32_0 = arith.constant 0 : i32
    return %arg0, %c0_i32 : i32, i32
  }
  func.func @transform_1(%arg0: i32) -> (i32, i32) {
    %c0_i32 = arith.constant 0 : i32
    %c0_i32_0 = arith.constant 0 : i32
    return %arg0, %c0_i32 : i32, i32
  }
  func.func @transform_2(%arg0: i32) -> (i32, i32) {
    %c0_i32 = arith.constant 0 : i32
    %c0_i32_0 = arith.constant 0 : i32
    %c0_i32_1 = arith.constant 0 : i32
    return %c0_i32, %c0_i32_0 : i32, i32
  }
  func.func @transform_3(%arg0: i32) -> (i32, i32) {
    %c0_i32 = arith.constant 0 : i32
    %c0_i32_0 = arith.constant 0 : i32
    %c0_i32_1 = arith.constant 0 : i32
    return %c0_i32, %c0_i32_0 : i32, i32
  }
  func.func @transform_4(%arg0: i32) -> (i32, i32) {
    %c0_i32 = arith.constant 0 : i32
    %c0_i32_0 = arith.constant 0 : i32
    %c0_i32_1 = arith.constant 0 : i32
    return %c0_i32, %c0_i32_0 : i32, i32
  }
  func.func @transform_5(%arg0: i32) -> (i32, i32) {
    %c0_i32 = arith.constant 0 : i32
    %c0_i32_0 = arith.constant 0 : i32
    %c0_i32_1 = arith.constant 0 : i32
    return %c0_i32, %c0_i32_0 : i32, i32
  }
  func.func @transform_6(%arg0: i32) -> (i32, i32) {
    %c0_i32 = arith.constant 0 : i32
    %c0_i32_0 = arith.constant 0 : i32
    %c0_i32_1 = arith.constant 0 : i32
    return %c0_i32, %c0_i32_0 : i32, i32
  }
  func.func @transform_7(%arg0: i32) -> (i32, i32) {
    %c0_i32 = arith.constant 0 : i32
    %c0_i32_0 = arith.constant 0 : i32
    %c0_i32_1 = arith.constant 0 : i32
    return %c0_i32, %c0_i32_0 : i32, i32
  }
  func.func @transform_8(%arg0: i32) -> (i32, i32) {
    %c0_i32 = arith.constant 0 : i32
    %c0_i32_0 = arith.constant 0 : i32
    %c0_i32_1 = arith.constant 0 : i32
    return %c0_i32, %c0_i32_0 : i32, i32
  }
  func.func @transform_9(%arg0: i32) -> (i32, i32) {
    %c0_i32 = arith.constant 0 : i32
    %c0_i32_0 = arith.constant 0 : i32
    %c0_i32_1 = arith.constant 0 : i32
    return %c0_i32, %c0_i32_0 : i32, i32
  }
  func.func @transform_10(%arg0: i32) -> (i32, i32) {
    %c0_i32 = arith.constant 0 : i32
    %c0_i32_0 = arith.constant 0 : i32
    %c0_i32_1 = arith.constant 0 : i32
    return %c0_i32, %c0_i32_0 : i32, i32
  }
  func.func @transform_11(%arg0: i32) -> (i32, i32) {
    %c0_i32 = arith.constant 0 : i32
    %c0_i32_0 = arith.constant 0 : i32
    %c0_i32_1 = arith.constant 0 : i32
    return %c0_i32, %c0_i32_0 : i32, i32
  }
  func.func @transform_12(%arg0: i32) -> (i32, i32) {
    %c0_i32 = arith.constant 0 : i32
    %c0_i32_0 = arith.constant 0 : i32
    %c0_i32_1 = arith.constant 0 : i32
    return %c0_i32, %c0_i32_0 : i32, i32
  }
  func.func @transform_13(%arg0: i32) -> (i32, i32) {
    %c0_i32 = arith.constant 0 : i32
    %c0_i32_0 = arith.constant 0 : i32
    %c0_i32_1 = arith.constant 0 : i32
    return %c0_i32, %c0_i32_0 : i32, i32
  }
  func.func @transform_14(%arg0: i32) -> (i32, i32) {
    %c0_i32 = arith.constant 0 : i32
    %c0_i32_0 = arith.constant 0 : i32
    return %arg0, %c0_i32 : i32, i32
  }
  func.func @transform_15(%arg0: i32) -> (i32, i32) {
    %c0_i32 = arith.constant 0 : i32
    %c0_i32_0 = arith.constant 0 : i32
    return %arg0, %c0_i32 : i32, i32
  }
  func.func @transform_16(%arg0: i32) -> (i32, i32) {
    %c0_i32 = arith.constant 0 : i32
    %c0_i32_0 = arith.constant 0 : i32
    return %arg0, %c0_i32 : i32, i32
  }
  func.func @transform_17(%arg0: i32) -> (i32, i32) {
    %c0_i32 = arith.constant 0 : i32
    %c0_i32_0 = arith.constant 0 : i32
    return %arg0, %c0_i32 : i32, i32
  }
}

</mosaic_0001>

<bundles_post_ra>
// kernel: vae_forward.1
= control target key start
LH: loop header
LB: loop body
LE: loop exit
PB: predicated region body
PF: predicated region fallthrough
CT: control target
= control target key end

     0   :  { %s1102_s0 = inlined_call_operand.vmem [shape: f32[8,16], index: 0, kind: input, shape index: {}]   ;;  %s1103_s1 = inlined_call_operand.vmem [shape: f32[8,8], index: 1, kind: input, shape index: {}]   ;;  %s1104_s2 = inlined_call_operand.vmem [shape: f32[16,32], index: 2, kind: input, shape index: {}]   ;;  %s1105_s3 = inlined_call_operand.vmem [shape: f32[1,32], index: 3, kind: input, shape index: {}]   ;;  %s1106_s4 = inlined_call_operand.vmem [shape: f32[32,32], index: 4, kind: input, shape index: {}]   ;;  %s1107_s5 = inlined_call_operand.vmem [shape: f32[1,32], index: 5, kind: input, shape index: {}]   ;;  %s1108_s6 = inlined_call_operand.vmem [shape: f32[32,16], index: 6, kind: input, shape index: {}]   ;;  %s1109_s7 = inlined_call_operand.vmem [shape: f32[1,16], index: 7, kind: input, shape index: {}]   ;;  %s1110_s8 = inlined_call_operand.vmem [shape: f32[8,32], index: 8, kind: input, shape index: {}]   ;;  %s1111_s9 = inlined_call_operand.vmem [shape: f32[1,32], index: 9, kind: input, shape index: {}]   ;;  %s1112_s10 = inlined_call_operand.vmem [shape: f32[32,32], index: 10, kind: input, shape index: {}]   ;;  %s1113_s11 = inlined_call_operand.vmem [shape: f32[1,32], index: 11, kind: input, shape index: {}]   ;;  %s1114_s12 = inlined_call_operand.vmem [shape: f32[32,16], index: 12, kind: input, shape index: {}]   ;;  %s1115_s13 = inlined_call_operand.vmem [shape: f32[1,16], index: 13, kind: input, shape index: {}]   ;;  %s1116_s14 = inlined_call_operand.hbm [shape: f32[8,16], index: 14, kind: output, shape index: {0}]   ;;  %s1117_s15 = inlined_call_operand.hbm [shape: f32[8,8], index: 15, kind: output, shape index: {1}]   ;;  %s1118_s16 = inlined_call_operand.hbm [shape: f32[8,8], index: 16, kind: output, shape index: {2}]   ;;  %s1119_s17 = inlined_call_operand.vmem [shape: f32[8,8], index: 17, kind: output, shape index: {3}]  }
   0x1   :  { %1120 = sst [smem:[#allocation9_spill]] %s1102_s0 }
   0x2   :  { %1121 = sst [smem:[#allocation10_spill]] %s1103_s1 }
   0x3   :  { %23 = vsyncpa [#allocation3], 0  ;;  %v54_v0 = vld [vmem:[%s1104_s2] sm:$0xff]  ;;  %v55_v1 = vld [vmem:[%s1104_s2 + $0x8] sm:$0xff]  ;;  %v852_v2 = vmov 0.0|0.0   ;;  %vm853_vm0 = vmmov 0  }
   0x4   :  { %733 = vmatprep.subr.bf16.mxu0 %v852_v2  ;;  %v734_v3 = vpack.c.bf16 %v55_v1, %v54_v0  ;;  %v854_v4 = vmov 0.0  }
   0x5   :  { %681 = vmatprep.mubr.msk.f32.mxu0 %vm853_vm0, %v854_v4 }
   0x6   :  { %24 = vsyncpa [#allocation5], 0  ;;  %736 = vmatprep.subr.bf16.mxu1 %v852_v2  ;;  %692 = vmatprep.mubr.msk.f32.mxu1 %vm853_vm0, %v854_v4  ;;  %s1122_s0 = sld [smem:[#allocation9_spill]]  ;;  %vm63_vm1 = vcmask 130048   ;;  %v138_v6 = vld [vmem:[%s1106_s4] sm:$0xff]  ;;  %v139_v7 = vld [vmem:[%s1106_s4 + $0x8] sm:$0xff] }
   0x7   :  { %735 = vmatpush3.bf16.msra.mxu0 %v734_v3  ;;  %v140_v8 = vld [vmem:[%s1106_s4 + $0x10] sm:$0xff]  ;;  %v737_v9 = vpack.c.bf16 %v139_v7, %v138_v6  ;;  %v141_v10 = vld [vmem:[%s1106_s4 + $0x18] sm:$0xff]  ;;  %v640_v12 = vld [vmem:[%s1105_s3] ss:$0 sm:$0xff]  ;;  %vm149_vm2 = vcmask 261120   ;;  %s1123_s18 = sld [smem:[#allocation10_spill]] }
   0x8   :  { %742 = vmatprep.subr.bf16.mxu0 %v852_v2  ;;  %v740_v11 = vpack.c.bf16 %v141_v10, %v140_v8  ;;  %v224_v17 = vld [vmem:[%s1108_s6] sm:$0xff]  ;;  %v225_v18 = vld [vmem:[%s1108_s6 + $0x8] sm:$0xff]  ;;  %v226_v19 = vld [vmem:[%s1108_s6 + $0x10] sm:$0xff]  ;;  %s855_s19 = smov 8   ;;  %vm343_vm3 = vcmask 64512  }
   0x9   :  { %738 = vmatpush3.bf16.msra.mxu1 %v737_v9  ;;  %v743_v20 = vpack.c.bf16 %v225_v18, %v224_v17  ;;  %v227_v21 = vld [vmem:[%s1108_s6 + $0x18] sm:$0xff]  ;;  %v642_v24 = vld [vmem:[%s1107_s5] ss:$0 sm:$0xff]  ;;  %v419_v54 = vld [vmem:[%s1112_s10 + $0x8] sm:$0xff]  ;;  %s857_s5 = smov [#allocation4]  }
   0xa   :  { %739 = vmatprep.subr.bf16.mxu1 %v852_v2  ;;  %v746_v22 = vpack.c.bf16 %v227_v21, %v226_v19  ;;  %v644_v29 = vld [vmem:[%s1109_s7] ss:$0 sm:$0xff]  ;;  %s856_s7 = smov 120   ;;  %v420_v55 = vld [vmem:[%s1112_s10 + $0x10] sm:$0xff]  ;;  %v421_v57 = vld [vmem:[%s1112_s10 + $0x18] sm:$0xff]  ;;  %s611_s22 = sshll.u32 %s857_s5, 4  ;;  %s612_s22 = int_to_ptr.vmem [resolvable:$true] %s611_s22 }
   0xb   :  { %v335_v38 = vld [vmem:[%s1110_s8] sm:$0xff]  ;;  %v752_v58 = vpack.c.bf16 %v421_v57, %v420_v55  ;;  %v504_v1 = vld [vmem:[%s1114_s12 + $0x8] sm:$0xff]  ;;  %v505_v3 = vld [vmem:[%s1114_s12 + $0x10] sm:$0xff]  ;;  %p787_p1 = scmp.lt.s32.totalorder %s612_s22, %s612_s22 }
   0xc   :  { %v53_v5 = vld [vmem:[%s1122_s0] sm:$0xff] }
   0xd   :  { %682 = vmatmul.mubr.msk.f32.vlgmr.msra.gmra.mrb[0].mxu0 %vm63_vm1, %v53_v5  ;;  %741 = vmatpush3.bf16.msra.mxu1 %v740_v11  ;;  %v324_v23 = vld [vmem:[%s1123_s18] sm:$0xff]  ;;  %v506_v5 = vld [vmem:[%s1114_s12 + $0x18] sm:$0xff] }
   0xe   :  { %703 = vmatprep.mubr.msk.f32.mxu0 %vm853_vm0, %v854_v4  ;;  %706 = vmatprep.subr.mxu1 %v854_v4  ;;  %v418_v53 = vld [vmem:[%s1112_s10] sm:$0xff]  ;;  %v758_v6 = vpack.c.bf16 %v506_v5, %v505_v3 }
   0xf   :  { %744 = vmatpush3.bf16.msra.mxu0 %v743_v20  ;;  %326 = vrot.lane.b32.xlu0 %v324_v23, %s855_s19  ;;  %v749_v56 = vpack.c.bf16 %v419_v54, %v418_v53  ;;  %v646_v59 = vld [vmem:[%s1111_s9] ss:$0 sm:$0xff] }
  0x10   :  { %745 = vmatprep.subr.bf16.mxu0 %v852_v2  ;;  %v503_v0 = vld [vmem:[%s1114_s12] sm:$0xff]  ;;  %s782_s12 = scalar_lea.vmem %s612_s22, 128 }
  0x11   :  { %v648_v7 = vld [vmem:[%s1113_s11] ss:$0 sm:$0xff]  ;;  %p783_p0 = scmp.ne.s32.totalorder %s612_s22, %s782_s12  ;;  %p788_p2 = scmp.lt.s32.totalorder %s782_s12, %s782_s12 }
  0x13   :  { %747 = vmatpush3.bf16.msra.mxu0 %v746_v22  ;;  %p789_p3 = por %p788_p2, %p787_p1 }
  0x14   :  { %748 = vmatprep.subr.bf16.mxu0 %v852_v2 }
  0x15   :  { %p790_p4 = pnand %p789_p3, %p783_p0 }
  0x81   :  { %v327_v45 = vpop.permute.xlu0 %326 }
  0xe0   :  { %v133_v13 = vpop.f32.mrb[0].mxu0 }
  0xe1   :  { %v134_v14 = vadd.f32 %v640_v12, %v133_v13  ;;  %v683_v15 = vpop.f32.mrb[1].mxu0 }
  0xe3   :  { %768 = vtanh.f32 %v134_v14 }
  0xed   :  { %v769_v16 = vpop.eup %768 }
  0xee   :  { %693 = vmatmul.mubr.msk.f32.vlgmr.msra.gmra.mrb[0].mxu1 %vm149_vm2, %v769_v16 }
  0xef   :  { %708 = vmatprep.mubr.msk.f32.mxu1 %vm853_vm0, %v854_v4  ;;  %707 = vmatpush3.msra.mxu1 %v335_v38 }
  0xf0   :  { %754 = vmatprep.subr.bf16.mxu1 %v852_v2 }
 0x1c1   :  { %v219_v25 = vpop.f32.mrb[0].mxu1 }
 0x1c2   :  { %v220_v26 = vadd.f32 %v642_v24, %v219_v25  ;;  %v694_v27 = vpop.f32.mrb[1].mxu1 }
 0x1c4   :  { %770 = vtanh.f32 %v220_v26 }
 0x1ce   :  { %v771_v28 = vpop.eup %770 }
 0x1cf   :  { %704 = vmatmul.mubr.msk.f32.vlgmr.msra.gmra.mrb[2].mxu0 %vm149_vm2, %v771_v28 }
 0x1d0   :  { %719 = vmatprep.mubr.msk.f32.mxu0 %vm853_vm0, %v854_v4  ;;  %750 = vmatpush3.bf16.msra.mxu0 %v749_v56 }
 0x1d1   :  { %751 = vmatprep.subr.bf16.mxu0 %v852_v2 }
 0x1d4   :  { %753 = vmatpush3.bf16.msra.mxu0 %v752_v58 }
 0x2a2   :  { %v304_v30 = vpop.f32.mrb[2].mxu0 }
 0x2a3   :  { %v305_v31 = vadd.f32 %v644_v29, %v304_v30  ;;  %v705_v32 = vpop.f32.mrb[3].mxu0 }
 0x2a5   :  { %v309_v33 = vand.u32 2147483647, %v305_v31  ;;  %588 = vst.msk [vmem:[#allocation4] sm:$0xff] %vm343_vm3, %v305_v31  ;;  %v308_v40 = vmax.f32 %v305_v31, 0.0 }
 0x2a7   :  { %v310_v34 = vsub.f32 0.0, %v309_v33 }
 0x2a9   :  { %v311_v35 = vmul.f32 1.442695, %v310_v34 }
 0x2ab   :  { %772 = vpow2.f32 %v311_v35 }
 0x2b5   :  { %v773_v36 = vpop.eup %772 }
 0x2b6   :  { %v313_v37 = vadd.f32 1.0, %v773_v36 }
 0x2b8   :  { %774 = vlog2.f32 %v313_v37 }
 0x2c2   :  { %v775_v39 = vpop.eup %774 }
 0x2c3   :  { %v315_v41 = vmul.f32 0.6931472, %v775_v39 }
 0x2c5   :  { %v316_v42 = vadd.f32 %v315_v41, %v308_v40 }
 0x2c7   :  { %590 = vrot.lane.b32.xlu1 %v316_v42, %s856_s7  ;;  %776 = vrsqrt.f32 %v316_v42  ;;  %vm319_vm4 = vcmp.eq.f32.partialorder %v316_v42, inf  ;;  %v322_v46 = vand.u32 2147483648, %v316_v42  ;;  %vm321_vm5 = vcmp.eq.f32.partialorder %v316_v42, 0.0 }
 0x2d1   :  { %v777_v43 = vpop.eup %776 }
 0x2d2   :  { %v318_v44 = vmul.f32 %v777_v43, %v316_v42 }
 0x2d4   :  { %v320_v47 = vsel %vm319_vm4, %v316_v42, %v318_v44 }
 0x2d5   :  { %v323_v48 = vsel %vm321_vm5, %v322_v46, %v320_v47 }
 0x2d6   :  { %v329_v49 = vmul.f32 %v327_v45, %v323_v48 }
 0x2d8   :  { %331 = vrot.lane.b32.xlu0 %v329_v49, %s856_s7 }
 0x339   :  { %v591_v50 = vpop.permute.xlu1 %590 }
 0x33a   :  { %593 = vst.msk [vmem:[#allocation6] sm:$0xff] %vm343_vm3, %v591_v50 }
 0x34a   :  { %v332_v51 = vpop.permute.xlu0 %331 }
 0x34b   :  { %v334_v52 = vadd.f32 %v332_v51, %v305_v31 }
 0x34d   :  { %594 = vst.msk [vmem:[%s1119_s17] sm:$0xff] %vm343_vm3, %v334_v52  ;;  %709 = vmatmul.mubr.msk.f32.vlgmr.msra.gmra.mrb[2].mxu1 %vm343_vm3, %v334_v52 }
 0x34e   :  { %730 = vmatprep.mubr.msk.f32.mxu1 %vm853_vm0, %v854_v4  ;;  %v755_v4 = vpack.c.bf16 %v504_v1, %v503_v0 }
 0x350   :  { %756 = vmatpush3.bf16.msra.mxu1 %v755_v4 }
 0x351   :  { %757 = vmatprep.subr.bf16.mxu1 %v852_v2 }
 0x354   :  { %759 = vmatpush3.bf16.msra.mxu1 %v758_v6 }
 0x420   :  { %v413_v60 = vpop.f32.mrb[2].mxu1 }
 0x421   :  { %v414_v61 = vadd.f32 %v646_v59, %v413_v60  ;;  %v710_v62 = vpop.f32.mrb[3].mxu1 }
 0x423   :  { %778 = vtanh.f32 %v414_v61 }
 0x42d   :  { %v779_v63 = vpop.eup %778 }
 0x42e   :  { %720 = vmatmul.mubr.msk.f32.vlgmr.msra.gmra.mrb[4].mxu0 %vm149_vm2, %v779_v63 }
 0x501   :  { %v498_v8 = vpop.f32.mrb[4].mxu0 }
 0x502   :  { %v499_v9 = vadd.f32 %v648_v7, %v498_v8  ;;  %v721_v10 = vpop.f32.mrb[5].mxu0 }
 0x504   :  { %780 = vtanh.f32 %v499_v9 }
 0x50e   :  { %v781_v11 = vpop.eup %780 }
 0x50f   :  { %731 = vmatmul.mubr.msk.f32.vlgmr.msra.gmra.mrb[4].mxu1 %vm149_vm2, %v781_v11 }
 0x510   :  { %793 = shalt.err (!%p790_p4)
}
 0x511   :  { %s794_s11 = scalar_lea.hbm %s1117_s15, 128 }
 0x512   :  { %p795_p5 = scmp.ne.s32.totalorder %s1117_s15, %s794_s11  ;;  %p798_p6 = scmp.lt.u32.totalorder %s794_s11, %s1117_s15 }
 0x514   :  { %p800_p7 = pnand %p798_p6, %p795_p5 }
 0x516   :  { %803 = shalt.err (!%p800_p7)
}
 0x517   :  { %614 = dma.vmem_to_hbm [thread:$0]  %s612_s22, 128, %s1117_s15, [#allocation5]  }
 0x518   :  { %s858_s3 = smov [#allocation6]  }
 0x519   :  { %s621_s28 = sshll.u32 %s858_s3, 4  ;;  %s622_s28 = int_to_ptr.vmem [resolvable:$true] %s621_s28 }
 0x51a   :  { %s804_s17 = scalar_lea.vmem %s622_s28, 128  ;;  %p809_p9 = scmp.lt.s32.totalorder %s622_s28, %s622_s28 }
 0x51b   :  { %p805_p8 = scmp.ne.s32.totalorder %s622_s28, %s804_s17  ;;  %p810_p10 = scmp.lt.s32.totalorder %s804_s17, %s804_s17 }
 0x51d   :  { %p811_p11 = por %p810_p10, %p809_p9 }
 0x51f   :  { %p812_p12 = pnand %p811_p11, %p805_p8 }
 0x521   :  { %815 = shalt.err (!%p812_p12)
}
 0x522   :  { %s816_s2 = scalar_lea.hbm %s1118_s16, 128 }
 0x523   :  { %p817_p13 = scmp.ne.s32.totalorder %s1118_s16, %s816_s2  ;;  %p820_p0 = scmp.lt.u32.totalorder %s816_s2, %s1118_s16 }
 0x525   :  { %p822_p1 = pnand %p820_p0, %p817_p13 }
 0x527   :  { %825 = shalt.err (!%p822_p1)
}
 0x528   :  { %624 = dma.vmem_to_hbm [thread:$0]  %s622_s28, 128, %s1118_s16, [#allocation5]   ;;  %v650_v2 = vld [vmem:[%s1115_s13] ss:$0 sm:$0xff] }
 0x529   :  { %s859_s6 = smov [#allocation2]  }
 0x52a   :  { %s601_s21 = sshll.u32 %s859_s6, 4  ;;  %s602_s21 = int_to_ptr.vmem [resolvable:$true] %s601_s21 }
 0x52b   :  { %s826_s5 = scalar_lea.vmem %s602_s21, 128  ;;  %p831_p3 = scmp.lt.s32.totalorder %s602_s21, %s602_s21 }
 0x52c   :  { %p827_p2 = scmp.ne.s32.totalorder %s602_s21, %s826_s5  ;;  %p832_p4 = scmp.lt.s32.totalorder %s826_s5, %s826_s5 }
 0x52e   :  { %p833_p5 = por %p832_p4, %p831_p3 }
 0x530   :  { %p834_p6 = pnand %p833_p5, %p827_p2 }
 0x5e2   :  { %v583_v12 = vpop.f32.mrb[4].mxu1 }
 0x5e3   :  { %v584_v13 = vadd.f32 %v650_v2, %v583_v12  ;;  %v732_v14 = vpop.f32.mrb[5].mxu1 }
 0x5e5   :  { %587 = vst.msk [vmem:[#allocation2] sm:$0xff] %vm63_vm1, %v584_v13 }
 0x5e6   :  { %837 = shalt.err (!%p834_p6)
}
 0x5e7   :  { %s838_s12 = scalar_lea.hbm %s1116_s14, 128 }
 0x5e8   :  { %p839_p7 = scmp.ne.s32.totalorder %s1116_s14, %s838_s12  ;;  %p842_p8 = scmp.lt.u32.totalorder %s838_s12, %s1116_s14 }
 0x5ea   :  { %p844_p9 = pnand %p842_p8, %p839_p7 }
 0x5ec   :  { %847 = shalt.err (!%p844_p9)
}
 0x5ed   :  { %604 = dma.vmem_to_hbm [thread:$0]  %s602_s21, 128, %s1116_s14, [#allocation3]  }
 0x5ee   :  { %848 = dma.done.wait [#allocation3], 128  }
 0x5ef   :  { %849 = vsyncadd [#allocation3], 4294967168 }
 0x5f0   :  { %850 = dma.done.wait [#allocation5], 256  }
 0x5f1   :  { %851 = vsyncadd [#allocation5], 4294967040 }
 0x5f2   :  { %638 = vsyncpa [#allocation3], 1 }
 0x5f3   :  { %639 = vsyncpa [#allocation5], 1 }

</bundles_post_ra>
